<compile_context>
chip_gen: v7x
topology: tpu7x:2x2x1
jax: 0.10.0
libtpu: 0.0.40
codegen_flags: <defaults>
</compile_context>

<pallas_src>
import functools

import jax
import jax.numpy as jnp
from jax.experimental import pallas as pl
from jax.experimental.pallas import tpu as pltpu

_LANES = 128
_LANE_BLK = 8 * _LANES          # elements in one (8, 128) f32 tile
_MIB = 1024 * 1024


def _ceil_to(a, b):
    return -(-a // b) * b


def _norm_reduce_kernel(x_ref, o_ref, *scratch, inv_c, n_k):
    # x_ref: (nb, ct, lt)   o_ref: (nb, 1, lt)   scratch: ((nb, 1, lt) f32,) if n_k > 1
    # abs in native dtype, f32 accumulation across channels, scale by 1/C.
    part = jnp.sum(jnp.abs(x_ref[...]), axis=1, keepdims=True, dtype=jnp.float32)

    if n_k == 1:                       # all channels resident: write result directly
        o_ref[...] = (part * inv_c).astype(o_ref.dtype)
        return

    acc_ref, = scratch
    k = pl.program_id(2)

    @pl.when(k == 0)
    def _():
        acc_ref[...] = part

    @pl.when(k > 0)
    def _():
        acc_ref[...] += part

    @pl.when(k == n_k - 1)
    def _():
        o_ref[...] = (acc_ref[...] * inv_c).astype(o_ref.dtype)


def _select_tiles(N, C, HW, itemsize, target_bytes):
    """Block dims (nb, ct, lt) over (batch, channel, flattened spatial).

    Sizes are judged on the padded VMEM layout: the channel axis sits on
    sublanes (padded to the dtype's sublane packing) and the spatial axis on
    lanes (padded to 128)."""
    sub = 8 * max(1, 4 // itemsize)          # sublane packing: 8 f32 / 16 bf16 / 32 int8
    cpad = _ceil_to(C, sub)
    hw_pad = _ceil_to(HW, _LANES)

    per_batch = cpad * hw_pad * itemsize     # one (C, HW) plane as laid out in VMEM
    if per_batch <= target_bytes:
        # Whole plane fits: group batch elements up to the byte target.
        nb = max(1, min(N, target_bytes // per_batch))
        # Only manufacture >=2 grid steps when pipelining / megacore matters.
        if N >= 2 and -(-N // nb) < 2 and N * per_batch > 4 * _MIB:
            nb = -(-N // 2)
        return nb, C, HW

    # One batch element per block; tile the flattened spatial axis.
    nb = 1
    lt_all_c = (target_bytes // (cpad * itemsize)) // _LANE_BLK * _LANE_BLK
    lt_floor = min(4 * _LANE_BLK, hw_pad)    # keep per-(n, c) DMA slabs >= ~16 KiB
    if lt_all_c >= lt_floor:
        # All channels resident; lt is a multiple of 1024 (< HW) by construction.
        return nb, C, min(lt_all_c, HW)

    # Channel axis too large: tile it as well (accumulator path in the kernel).
    lt = min(HW, 4 * _LANE_BLK)
    budget = max(target_bytes, sub * lt * itemsize)   # always admit one sublane group
    ct = 1
    for d in range(1, C + 1):
        if C % d == 0 and _ceil_to(d, sub) * lt * itemsize <= budget:
            ct = d
    # TODO(synk): if C is huge with no divisor that is a sublane multiple, ct may
    # violate the (8,128) second-minor block rule; pad the channel axis once in
    # HBM for that pathological case.
    return nb, ct, lt


def norm_reducer(x, dim=1, *, target_block_bytes=None):
    """x: (N, C, H, W); returns abs(x).mean(axis=1) computed with a Pallas kernel."""
    assert dim == 1, "This kernel is specialized for reduction over the channel axis."
    N, C, H, W = x.shape
    HW = H * W
    out_dtype = x.dtype                       # torch's .abs().mean(dim) keeps dtype
    itemsize = jnp.dtype(x.dtype).itemsize
    out_itemsize = jnp.dtype(out_dtype).itemsize

    # Per-generation budgets (v7x: 64 MiB/TC VMEM; v5e/v6e: 128 MiB).
    try:
        vmem_cap = int(pltpu.get_tpu_info().vmem_capacity_bytes)
    except Exception:
        vmem_cap = 64 * _MIB
    vmem_budget = min(vmem_cap * 3 // 4, 100 * _MIB)   # ~48 MiB v7x, ~96 MiB v5e/v6e
    if target_block_bytes is None:
        target_block_bytes = 16 * _MIB if vmem_cap <= 64 * _MIB else 24 * _MIB

    sub = 8 * max(1, 4 // itemsize)

    # Pick block dims; shrink the byte target if the double-buffered (padded)
    # blocks plus the accumulator would exceed the VMEM budget.
    tgt = int(target_block_bytes)
    while True:
        nb, ct, lt = _select_tiles(N, C, HW, itemsize, tgt)
        ltp = _ceil_to(lt, _LANES)
        in_blk = nb * _ceil_to(ct, sub) * ltp * itemsize
        out_blk = nb * (8 * max(1, 4 // out_itemsize)) * ltp * out_itemsize
        acc_blk = nb * 8 * ltp * 4
        vmem_needed = 2 * (in_blk + out_blk) + acc_blk + 4 * _MIB
        if vmem_needed <= vmem_budget or tgt <= _MIB:
            break
        tgt //= 2

    n_k = C // ct                              # ct always divides C (no ragged C block)
    grid = (pl.cdiv(N, nb), pl.cdiv(HW, lt), n_k)

    x3 = x.reshape(N, C, HW)                   # free: contiguous reshape, no HBM copy
    kernel = functools.partial(_norm_reduce_kernel, inv_c=1.0 / C, n_k=n_k)
    scratch = [] if n_k == 1 else [pltpu.VMEM((nb, 1, lt), jnp.float32)]

    y3 = pl.pallas_call(
        kernel,
        out_shape=jax.ShapeDtypeStruct((N, 1, HW), out_dtype),
        grid_spec=pltpu.PrefetchScalarGridSpec(
            num_scalar_prefetch=0,
            grid=grid,
            in_specs=[pl.BlockSpec((nb, ct, lt), lambda b, s, k: (b, k, s))],
            out_specs=pl.BlockSpec((nb, 1, lt), lambda b, s, k: (b, 0, s)),
            scratch_shapes=scratch,
        ),
        compiler_params=pltpu.CompilerParams(
            dimension_semantics=("parallel", "parallel", "arbitrary"),
            vmem_limit_bytes=int(min(vmem_budget, max(32 * _MIB, vmem_needed))),
        ),
        cost_estimate=pl.CostEstimate(
            flops=2 * N * C * HW,
            transcendentals=0,
            bytes_accessed=N * C * HW * itemsize + N * HW * out_itemsize,
        ),
    )(x3)

    return y3.reshape(N, H, W)                 # free: contiguous reshape, no HBM copy


if __name__ == "__main__":
    key = jax.random.PRNGKey(0)
    k1, k2, k3, k4, k5 = jax.random.split(key, 5)

    # 1) Primary case (matches the module's expected usage).
    x = jax.random.normal(k1, (2, 4, 16, 16), dtype=jnp.float32)
    y = jax.block_until_ready(norm_reducer(x, dim=1))
    assert y.shape == (2, 16, 16) and y.dtype == x.dtype
    assert jnp.allclose(y, jnp.mean(jnp.abs(x), axis=1), atol=1e-5, rtol=1e-5)

    # 2) Ragged spatial extent (H*W not a multiple of 128): no pad round trip.
    x2 = jax.random.normal(k2, (2, 3, 5, 7), dtype=jnp.float32)
    y2 = jax.block_until_ready(norm_reducer(x2, dim=1))
    assert y2.shape == (2, 5, 7)
    assert jnp.allclose(y2, jnp.mean(jnp.abs(x2), axis=1), atol=1e-5, rtol=1e-5)

    # 3) Forced-small target: exercises multiple batch steps and the
    #    channel-tiled accumulator path (pl.when init / accumulate / finalize).
    x3 = jax.random.normal(k3, (2, 16, 8, 160), dtype=jnp.float32)
    y3 = jax.block_until_ready(norm_reducer(x3, dim=1, target_block_bytes=16 * 1024))
    assert jnp.allclose(y3, jnp.mean(jnp.abs(x3), axis=1), atol=1e-5, rtol=1e-5)

    # 4) Forced-small target: spatial tiling with a ragged final block, all
    #    channels resident (masked output writeback on the edge block).
    x4 = jax.random.normal(k4, (1, 4, 37, 128), dtype=jnp.float32)
    y4 = jax.block_until_ready(norm_reducer(x4, dim=1, target_block_bytes=128 * 1024))
    assert jnp.allclose(y4, jnp.mean(jnp.abs(x4), axis=1), atol=1e-5, rtol=1e-5)

    # 5) bf16 input: output keeps the input dtype, accumulation stays in f32.
    x5 = jax.random.normal(k5, (2, 4, 16, 16), dtype=jnp.bfloat16)
    y5 = jax.block_until_ready(norm_reducer(x5, dim=1))
    ref5 = jnp.mean(jnp.abs(x5).astype(jnp.float32), axis=1).astype(jnp.bfloat16)
    assert y5.dtype == jnp.bfloat16
    assert jnp.allclose(y5.astype(jnp.float32), ref5.astype(jnp.float32),
                        atol=1e-2, rtol=1e-2)

    print("KERNEL_OK")
</pallas_src>

<mosaic_0001>
module attributes {stable_mosaic.version = 11 : i64} {
  func.func @_norm_reduce_kernel(%arg0: i32, %arg1: i32, %arg2: i32, %arg3: memref<2x4x256xf32, #tpu.memory_space<vmem>>, %arg4: memref<2x1x256xf32, #tpu.memory_space<vmem>>) attributes {dimension_semantics = [#tpu.dimension_semantics<parallel>, #tpu.dimension_semantics<parallel>, #tpu.dimension_semantics<arbitrary>], iteration_bounds = array<i64: 1, 1, 1>, scalar_prefetch = 0 : i64, scratch_operands = 0 : i64, tpu.core_type = #tpu.core_type<tc>, window_params = [{transform_indices = @transform_0, window_bounds = array<i64: 2, 4, 256>}, {transform_indices = @transform_1, window_bounds = array<i64: 2, 1, 256>}]} {
    %c0 = arith.constant 0 : index
    %c0_0 = arith.constant 0 : index
    %c0_1 = arith.constant 0 : index
    %0 = vector.load %arg3[%c0, %c0_0, %c0_1] : memref<2x4x256xf32, #tpu.memory_space<vmem>>, vector<2x4x256xf32>
    %1 = math.absf %0 : vector<2x4x256xf32>
    %cst = arith.constant dense<0.000000e+00> : vector<2x256xf32>
    %2 = vector.multi_reduction <add>, %1, %cst [1] : vector<2x4x256xf32> to vector<2x256xf32>
    %3 = vector.shape_cast %2 : vector<2x256xf32> to vector<2x1x256xf32>
    %cst_2 = arith.constant 2.500000e-01 : f32
    %4 = vector.broadcast %cst_2 : f32 to vector<2x1x256xf32>
    %5 = arith.mulf %3, %4 : vector<2x1x256xf32>
    %c0_3 = arith.constant 0 : index
    %c0_4 = arith.constant 0 : index
    %c0_5 = arith.constant 0 : index
    %6 = vector.load %arg4[%c0_3, %c0_4, %c0_5] : memref<2x1x256xf32, #tpu.memory_space<vmem>>, vector<2x1x256xf32>
    tpu.vector_store %arg4[%c0_3, %c0_4, %c0_5], %5 {strides = array<i32>} : memref<2x1x256xf32, #tpu.memory_space<vmem>>, vector<2x1x256xf32>,
    return
  }
  func.func @transform_0(%arg0: i32, %arg1: i32, %arg2: i32) -> (i32, i32, i32) {
    %c0_i32 = arith.constant 0 : i32
    return %arg0, %arg2, %arg1 : i32, i32, i32
  }
  func.func @transform_1(%arg0: i32, %arg1: i32, %arg2: i32) -> (i32, i32, i32) {
    %c0_i32 = arith.constant 0 : i32
    %c0_i32_0 = arith.constant 0 : i32
    return %arg0, %c0_i32, %arg1 : i32, i32, i32
  }
}

</mosaic_0001>

<bundles_post_ra>
// kernel: tpu_custom_call.1
= control target key start
LH: loop header
LB: loop body
LE: loop exit
PB: predicated region body
PF: predicated region fallthrough
CT: control target
= control target key end

     0   :  { %6 = vsyncpa [#allocation3], 0  ;;  %s221_s0 = inlined_call_operand.hbm [shape: f32[2,4,256], index: 0, kind: input, shape index: {}]   ;;  %s222_s1 = inlined_call_operand.hbm [shape: f32[2,1,256], index: 1, kind: output, shape index: {}]  }
   0x1   :  { %7 = vsyncpa [#allocation4], 0  ;;  %s180_s6 = smov [#allocation2]   ;;  %s132_s10 = scalar_lea.hbm %s221_s0, 256 }
   0x2   :  { %s13_s7 = sshll.u32 %s180_s6, 4  ;;  %p133_p0 = scmp.ne.s32.totalorder %s221_s0, %s132_s10  ;;  %s14_s7 = int_to_ptr.vmem [resolvable:$true] %s13_s7 }
   0x3   :  { %p136_p1 = scmp.lt.u32.totalorder %s132_s10, %s221_s0 }
   0x5   :  { %p138_p2 = pnand %p136_p1, %p133_p0 }
   0x7   :  { %141 = shalt.err (!%p138_p2)
}
   0x8   :  { %s142_s15 = scalar_lea.vmem %s14_s7, 256  ;;  %p147_p4 = scmp.lt.s32.totalorder %s14_s7, %s14_s7 }
   0x9   :  { %p143_p3 = scmp.ne.s32.totalorder %s14_s7, %s142_s15  ;;  %p148_p5 = scmp.lt.s32.totalorder %s142_s15, %s142_s15 }
   0xb   :  { %p149_p6 = por %p148_p5, %p147_p4 }
   0xd   :  { %p150_p7 = pnand %p149_p6, %p143_p3 }
   0xf   :  { %153 = shalt.err (!%p150_p7)
}
  0x10   :  { %s181_s16 = smov 128   ;;  %s182_s17 = smov 8  }
  0x11   :  { %19 = dma.hbm_to_vmem [thread:$0]  %s221_s0, 256, %s14_s7, [#allocation3], %s181_s16, %s181_s16, %s182_s17  }
  0x12   :  { %176 = dma.done.wait [#allocation3], 256  }
  0x13   :  { %177 = vsyncadd [#allocation3], 4294967040  ;;  %v23_v0 = vld [vmem:[#allocation2] sm:$0xff]  ;;  %vm33_vm0 = vcmask 1043456   ;;  %v24_v1 = vld [vmem:[#allocation2 + $0x8] sm:$0xff]  ;;  %v74_v22 = vlaneseq  ;;  %s184_s0 = smov [#allocation5]  }
  0x14   :  { %v25_v2 = vand.u32 2147483647, %v23_v0  ;;  %v26_v3 = vand.u32 2147483647, %v24_v1  ;;  %v183_v20 = vmov 1966171168  }
  0x15   :  { %v72_v21 = vunpack.c.l.s4 %v183_v20  ;;  %v75_v32 = vshrl.u32 %v74_v22, 7  ;;  %s113_s20 = sshll.u32 %s184_s0, 4  ;;  %vm104_vm1 = vcmp.lt.s32.totalorder %v74_v22, 256  ;;  %s114_s20 = int_to_ptr.vmem [resolvable:$true] %s113_s20 }
  0x16   :  { %v29_v4 = vcombine.high %v25_v2, %v25_v2  ;;  %v34_v5 = vsel %vm33_vm0, %v25_v2, 0.0  ;;  %v30_v6 = vcombine.high %v26_v3, %v26_v3  ;;  %v48_v7 = vsel %vm33_vm0, %v26_v3, 0.0  ;;  %s154_s21 = scalar_lea.vmem %s114_s20, 64  ;;  %p159_p9 = scmp.lt.s32.totalorder %s114_s20, %s114_s20 }
  0x17   :  { %v35_v8 = vrot.slane %v34_v5, 4  ;;  %v49_v9 = vrot.slane %v48_v7, 4  ;;  %v73_v31 = vunpack.c.0.s8 %v72_v21  ;;  %p155_p8 = scmp.ne.s32.totalorder %s114_s20, %s154_s21  ;;  %p160_p10 = scmp.lt.s32.totalorder %s154_s21, %s154_s21 }
  0x18   :  { %v41_v10 = vsel %vm33_vm0, %v29_v4, 0.0  ;;  %v55_v11 = vsel %vm33_vm0, %v30_v6, 0.0 }
  0x19   :  { %v36_v12 = vadd.f32 %v35_v8, %v34_v5  ;;  %v42_v13 = vrot.slane %v41_v10, 4  ;;  %v50_v14 = vadd.f32 %v49_v9, %v48_v7  ;;  %v56_v15 = vrot.slane %v55_v11, 4  ;;  %p161_p11 = por %p160_p10, %p159_p9 }
  0x1a   :  { %v76_v42 = vsub.s32 %v73_v31, %v75_v32 }
  0x1b   :  { %v37_v16 = vrot.slane %v36_v12, 2  ;;  %v43_v17 = vadd.f32 %v42_v13, %v41_v10  ;;  %v51_v18 = vrot.slane %v50_v14, 2  ;;  %v57_v19 = vadd.f32 %v56_v15, %v55_v11  ;;  %p162_p12 = pnand %p161_p11, %p155_p8 }
  0x1d   :  { %v38_v23 = vadd.f32 %v37_v16, %v36_v12  ;;  %v44_v24 = vrot.slane %v43_v17, 2  ;;  %v52_v25 = vadd.f32 %v51_v18, %v50_v14  ;;  %v58_v26 = vrot.slane %v57_v19, 2 }
  0x1f   :  { %v39_v27 = vrot.slane %v38_v23, 1  ;;  %v45_v28 = vadd.f32 %v44_v24, %v43_v17  ;;  %v53_v29 = vrot.slane %v52_v25, 1  ;;  %v59_v30 = vadd.f32 %v58_v26, %v57_v19 }
  0x21   :  { %v40_v33 = vadd.f32 %v39_v27, %v38_v23  ;;  %v46_v34 = vrot.slane %v45_v28, 1  ;;  %v54_v35 = vadd.f32 %v53_v29, %v52_v25  ;;  %v60_v36 = vrot.slane %v59_v30, 1 }
  0x23   :  { %v47_v37 = vadd.f32 %v46_v34, %v45_v28  ;;  %v62_v38 = vmul.f32 0.25, %v40_v33  ;;  %v61_v39 = vadd.f32 %v60_v36, %v59_v30  ;;  %v64_v40 = vmul.f32 0.25, %v54_v35 }
  0x25   :  { %v63_v41 = vmul.f32 0.25, %v47_v37  ;;  %v65_v43 = vmul.f32 0.25, %v61_v39 }
  0x27   :  { %v70_v44 = vcombine.low %v62_v38, %v63_v41  ;;  %v85_v45 = vcombine.low %v64_v40, %v65_v43 }
  0x29   :  { %v77_v46 = vrot.slane %v70_v44, %v76_v42  ;;  %v92_v47 = vrot.slane %v85_v45, %v76_v42 }
  0x2b   :  { %v84_v48 = vrot.slane %v77_v46, %v76_v42  ;;  %v99_v49 = vrot.slane %v92_v47, %v76_v42 }
  0x2d   :  { %106 = vst.msk [vmem:[#allocation5] sm:$0x3] %vm104_vm1, %v84_v48  ;;  %107 = vst.msk [vmem:[#allocation5 + $0x2] sm:$0x3] %vm104_vm1, %v99_v49 }
  0x2e   :  { %165 = shalt.err (!%p162_p12)
}
  0x2f   :  { %s166_s24 = scalar_lea.hbm %s222_s1, 64 }
  0x30   :  { %p167_p13 = scmp.ne.s32.totalorder %s222_s1, %s166_s24  ;;  %p170_p0 = scmp.lt.u32.totalorder %s166_s24, %s222_s1 }
  0x32   :  { %p172_p1 = pnand %p170_p0, %p167_p13 }
  0x34   :  { %175 = shalt.err (!%p172_p1)
}
  0x35   :  { %s185_s29 = smov 32   ;;  %s186_s30 = smov 2  }
  0x36   :  { %119 = dma.vmem_to_hbm [thread:$0]  %s114_s20, 64, %s222_s1, [#allocation4], %s185_s29, %s185_s29, %s186_s30  }
  0x37   :  { %178 = dma.done.wait [#allocation4], 64  }
  0x38   :  { %179 = vsyncadd [#allocation4], 4294967232 }
  0x39   :  { %123 = vsyncpa [#allocation3], 1 }
  0x3a   :  { %124 = vsyncpa [#allocation4], 1 }

</bundles_post_ra>
